<compile_context>
chip_gen: v5e
topology: v5e:2x2
jax: 0.10.0
libtpu: 0.0.40
codegen_flags: <defaults>
</compile_context>

<pallas_src>
import jax
import jax.numpy as jnp
from jax.experimental import pallas as pl
from jax.experimental.pallas import tpu as pltpu


# 2 MiB per block; Pallas double-buffers the input AND output spec, so the
# resident VMEM is ~4x this (~8 MiB) — safe on v5e / v6e / v7x defaults.
_BLOCK_BUDGET_BYTES = 2 << 20


def _identity_copy_kernel(x_ref, o_ref):
    # Straight VMEM copy of the current tile.
    o_ref[...] = x_ref[...]


def _largest_divisor(n, align, limit):
    """Largest divisor d of n with d % align == 0 and d <= limit.

    Assumes n % align == 0 and limit >= align (so `align` itself is always a
    valid answer).
    """
    best = align
    i = 1
    while i * i <= n:
        if n % i == 0:
            for d in (i, n // i):
                if d % align == 0 and best < d <= limit:
                    best = d
        i += 1
    return best


def _pick_tiles(M, N, itemsize, budget=_BLOCK_BUDGET_BYTES):
    """Pick (tm, tn) block dims: aligned, dividing (M, N), within budget."""
    # Column (lane) tile: multiple of 128 for unmasked lane-dense stores;
    # fall back to full N when N is not 128-aligned (full extent is legal).
    if N % 128 == 0:
        tn = _largest_divisor(N, 128, max(128, budget // (8 * itemsize)))
    else:
        tn = N
    # Row (sublane) tile: multiple of 8; full M when not 8-aligned.
    if M % 8 == 0:
        tm = _largest_divisor(M, 8, max(8, budget // (tn * itemsize)))
    else:
        tm = M
    return tm, tn


def _maybe_split_for_megacore(M, N, tm, tn, itemsize, min_bytes=1 << 20):
    """Ensure >= 2 grid steps for tensors big enough to benefit.

    A single grid step pins the copy to one TensorCore; splitting lets the
    'parallel' grid axes shard across v7x's 2 TCs.  Tiny tensors are left as
    a single block (per-step overhead would dominate).
    """
    if (M // tm) * (N // tn) > 1 or M * N * itemsize < min_bytes:
        return tm, tn
    if M % 8 == 0 and M // 2 >= 8:
        return _largest_divisor(M, 8, M // 2), tn
    if N % 128 == 0 and N // 2 >= 128:
        return tm, _largest_divisor(N, 128, N // 2)
    return tm, tn


def _identity_copy_pallas(x):
    """Materialise a bit-exact copy of `x` with a tiled Pallas memcpy."""
    orig_shape = x.shape

    # Metadata-only contiguous merges; for NCHW this puts H*W on the lane
    # (last) axis so loads/stores are lane-dense when H*W % 128 == 0.
    if x.ndim == 4:
        B, C, H, W = x.shape
        x2 = x.reshape(B * C, H * W)
    elif x.ndim >= 2:
        x2 = x.reshape(-1, x.shape[-1])
    else:
        x2 = x.reshape(1, -1)

    M, N = x2.shape
    itemsize = x2.dtype.itemsize
    tm, tn = _pick_tiles(M, N, itemsize)
    tm, tn = _maybe_split_for_megacore(M, N, tm, tn, itemsize)

    out2 = pl.pallas_call(
        _identity_copy_kernel,
        out_shape=jax.ShapeDtypeStruct((M, N), x2.dtype),
        grid=(M // tm, N // tn),
        in_specs=[pl.BlockSpec((tm, tn), lambda i, j: (i, j))],
        out_specs=pl.BlockSpec((tm, tn), lambda i, j: (i, j)),
        compiler_params=pltpu.CompilerParams(
            dimension_semantics=("parallel", "parallel"),
            vmem_limit_bytes=32 << 20,
        ),
    )(x2)

    return out2.reshape(orig_shape)


def identity_forward(x, *, force_copy=False):
    """nn.Identity forward pass.

    Default path returns the input unchanged — zero HBM traffic, the optimal
    identity on every TPU generation.  Pass `force_copy=True` to route
    through the Pallas copy kernel when a distinct output buffer is required.
    """
    if not force_copy:
        return x
    return _identity_copy_pallas(x)


if __name__ == "__main__":
    # Small shape consistent with the module's usage (any tensor works).
    B, C, H, W = 2, 4, 16, 16

    key = jax.random.PRNGKey(0)
    x = jax.random.normal(key, (B, C, H, W), dtype=jnp.float32)

    # Optimal path: no pallas_call, no copy.
    out_fast = jax.block_until_ready(identity_forward(x))

    # Pallas copy path: compile + run the kernel once and validate it.
    out_pallas = jax.block_until_ready(identity_forward(x, force_copy=True))

    # Identity semantics: output must equal input exactly.
    assert out_fast.shape == x.shape and out_fast.dtype == x.dtype
    assert out_pallas.shape == x.shape and out_pallas.dtype == x.dtype
    assert jnp.array_equal(out_fast, x)
    assert jnp.array_equal(out_pallas, x)

    print("KERNEL_OK")
</pallas_src>

<mosaic_0001>
module attributes {stable_mosaic.version = 11 : i64} {
  func.func @_identity_copy_kernel(%arg0: i32, %arg1: i32, %arg2: memref<8x256xf32, #tpu.memory_space<vmem>>, %arg3: memref<8x256xf32, #tpu.memory_space<vmem>>) attributes {dimension_semantics = [#tpu.dimension_semantics<parallel>, #tpu.dimension_semantics<parallel>], iteration_bounds = array<i64: 1, 1>, scalar_prefetch = 0 : i64, scratch_operands = 0 : i64, tpu.core_type = #tpu.core_type<tc>, window_params = [{transform_indices = @transform_0, window_bounds = array<i64: 8, 256>}, {transform_indices = @transform_1, window_bounds = array<i64: 8, 256>}]} {
    %c0 = arith.constant 0 : index
    %c0_0 = arith.constant 0 : index
    %0 = vector.load %arg2[%c0, %c0_0] : memref<8x256xf32, #tpu.memory_space<vmem>>, vector<8x256xf32>
    %c0_1 = arith.constant 0 : index
    %c0_2 = arith.constant 0 : index
    %1 = vector.load %arg3[%c0_1, %c0_2] : memref<8x256xf32, #tpu.memory_space<vmem>>, vector<8x256xf32>
    tpu.vector_store %arg3[%c0_1, %c0_2], %0 {strides = array<i32>} : memref<8x256xf32, #tpu.memory_space<vmem>>, vector<8x256xf32>,
    return
  }
  func.func @transform_0(%arg0: i32, %arg1: i32) -> (i32, i32) {
    %c0_i32 = arith.constant 0 : i32
    return %arg0, %arg1 : i32, i32
  }
  func.func @transform_1(%arg0: i32, %arg1: i32) -> (i32, i32) {
    %c0_i32 = arith.constant 0 : i32
    return %arg0, %arg1 : i32, i32
  }
}

</mosaic_0001>

<bundles_post_ra>
// kernel: tpu_custom_call.1
= control target key start
LH: loop header
LB: loop body
LE: loop exit
PB: predicated region body
PF: predicated region fallthrough
CT: control target
= control target key end

     0   :  { %6 = vsyncpa [#allocation3], 0  ;;  %s116_s0 = inlined_call_operand.hbm [shape: f32[8,256], index: 0, kind: input, shape index: {}]   ;;  %s117_s1 = inlined_call_operand.hbm [shape: f32[8,256], index: 1, kind: output, shape index: {}]  }
   0x1   :  { %7 = vsyncpa [#allocation4], 0  ;;  %s13_s8 = sshll.u32 %s116_s0, 4  ;;  %s98_s9 = smov [#allocation2]   ;;  %s14_s8 = int_to_ptr.hbm [resolvable:$true] %s13_s8 }
   0x2   :  { %s15_s10 = sshll.u32 %s98_s9, 4  ;;  %s16_s10 = int_to_ptr.vmem [resolvable:$true] %s15_s10 }
   0x3   :  { %18 = dma.hbm_to_vmem [thread:$0]  %s14_s8, 256, %s16_s10, [#allocation3]  }
   0x4   :  { %94 = dma.done.wait [#allocation3], 256  }
   0x5   :  { %95 = vsyncadd [#allocation3], 4294967040  ;;  %s99_s11 = smov [#allocation5]   ;;  %s34_s15 = sshll.u32 %s117_s1, 4  ;;  %v23_v0 = vld [vmem:[#allocation2] sm:$0xff]  ;;  %v24_v1 = vld [vmem:[#allocation2 + $0x8] sm:$0xff]  ;;  %s35_s15 = int_to_ptr.hbm [resolvable:$true] %s34_s15 }
   0x6   :  { %s32_s12 = sshll.u32 %s99_s11, 4  ;;  %25 = vst [vmem:[#allocation5] sm:$0xff] %v23_v0  ;;  %s33_s12 = int_to_ptr.vmem [resolvable:$true] %s32_s12 }
   0x7   :  { %26 = vst [vmem:[#allocation5 + $0x8] sm:$0xff] %v24_v1 }
   0x8   :  { %37 = dma.vmem_to_hbm [thread:$0]  %s33_s12, 256, %s35_s15, [#allocation4]  }
   0x9   :  { %96 = dma.done.wait [#allocation4], 256  }
   0xa   :  { %97 = vsyncadd [#allocation4], 4294967040 }
   0xb   :  { %42 = vsyncpa [#allocation3], 1 }
   0xc   :  { %43 = vsyncpa [#allocation4], 1 }

</bundles_post_ra>
